<compile_context>
chip_gen: v7x
topology: tpu7x:2x2x1
jax: 0.10.0
libtpu: 0.0.40
codegen_flags: <defaults>
</compile_context>

<pallas_src>
import functools

import numpy as np
import jax
import jax.numpy as jnp
from jax.experimental import pallas as pl
from jax.experimental.pallas import tpu as pltpu

KH, KW = 3, 5        # conv kernel (3, 5)
PH, PW = 1, 2        # padding (1, 2)  -> "same" conv


# ---------------------------------------------------------------------------
# Bicubic interpolation matrices (PyTorch convention: a = -0.75,
# align_corners=True, clamped border reads).  Built once in numpy (glue).
# ---------------------------------------------------------------------------
def _cubic_coeffs(t, A=-0.75):
    def c1(x):  # |x| <= 1
        return ((A + 2.0) * x - (A + 3.0)) * x * x + 1.0

    def c2(x):  # 1 < |x| < 2
        return ((A * x - 5.0 * A) * x + 8.0 * A) * x - 4.0 * A

    return np.array([c2(t + 1.0), c1(t), c1(1.0 - t), c2(2.0 - t)],
                    dtype=np.float64)


def _bicubic_matrix(in_size, out_size):
    """M such that (M @ v) is PyTorch 1-D bicubic resize of v (align_corners=True)."""
    M = np.zeros((out_size, in_size), dtype=np.float64)
    scale = 0.0 if out_size <= 1 else (in_size - 1) / (out_size - 1)
    for o in range(out_size):
        real = o * scale
        i0 = int(np.floor(real))
        t = real - i0
        coeffs = _cubic_coeffs(t)
        for k in range(4):
            idx = min(max(i0 - 1 + k, 0), in_size - 1)
            M[o, idx] += coeffs[k]
    return M.astype(np.float32)


# ---------------------------------------------------------------------------
# Pallas kernel (one grid step per slice)
# ---------------------------------------------------------------------------
def _lc2d_kernel(w_ref, bias_ref, xpad_ref, ahb_ref, awt_ref, o_ref, tmp_ref,
                 *, height, width):
    # w_ref   : (batch*15,) f32 SMEM   (flattened per-slice 3x5 weights)
    # bias_ref: (batch,)    f32 SMEM
    # xpad_ref: (height+2*PH, width+2*PW) f32 VMEM   (this slice, zero-padded)
    # ahb_ref : (out_ch, height) f32 VMEM            (ah columns for this slice)
    # awt_ref : (width, out_w)   f32 VMEM            (resident, constant block)
    # o_ref   : (1, out_ch, out_w) VMEM              (resident, written at end)
    # tmp_ref : (out_ch, width) f32 VMEM scratch     (accumulator over slices)
    b = pl.program_id(0)

    @pl.when(b == 0)
    def _init():
        tmp_ref[...] = jnp.zeros_like(tmp_ref)

    # ---- per-slice 3x5 "same" conv: 3 band loads + 15 lane-shifted taps ----
    base = b * (KH * KW)
    acc = None
    for dy in range(KH):
        band = xpad_ref[dy:dy + height, :]            # (height, width + 2*PW)
        for dx in range(KW):
            tap = band[:, dx:dx + width]              # in-register lane shift
            term = tap * w_ref[base + dy * KW + dx]
            acc = term if acc is None else acc + term
    acc = acc + bias_ref[b]                           # (height, width)

    # ---- fused first half of the bicubic resize, accumulated over slices --
    # (Optional bf16 knob for v6e/v7x: .astype(jnp.bfloat16) both operands.)
    tmp_ref[...] += jnp.dot(ahb_ref[...], acc,
                            preferred_element_type=jnp.float32)

    # ---- finalize: second resize matmul + output write ---------------------
    @pl.when(b == pl.num_programs(0) - 1)
    def _finalize():
        out = jnp.dot(tmp_ref[...], awt_ref[...],
                      preferred_element_type=jnp.float32)
        o_ref[...] = out[None].astype(o_ref.dtype)


# ---------------------------------------------------------------------------
# Wrapper
# ---------------------------------------------------------------------------
def locally_connected_2d(x, weights, biases, *, batch_size, out_channels,
                         bias_size):
    """x: (H_total, W) f32; weights: (batch, 3, 5); biases: (batch,)."""
    H_total, W = x.shape
    assert H_total % batch_size == 0
    height = H_total // batch_size

    # glue: per-slice zero padding for the "same" conv
    # TODO(synk): move this halo construction in-kernel to save one host-side
    #             full-array pad round trip (minor at these sizes).
    xr = x.reshape(batch_size, height, W).astype(jnp.float32)
    xpad = jnp.pad(xr, ((0, 0), (PH, PH), (PW, PW)))        # (B, h+2, W+4)

    w_flat = weights.reshape(batch_size * KH * KW).astype(jnp.float32)
    b_flat = biases.reshape(batch_size).astype(jnp.float32)

    # glue: precomputed bicubic interpolation operators.
    # ah (out_ch, H_total) is pre-split per slice into (batch, out_ch, height)
    # so each grid step gets its block with last-two-dims == full-array dims
    # (no (8,128) BlockSpec constraint, no in-kernel transpose).
    ah = _bicubic_matrix(H_total, out_channels)              # (out_ch, H)
    ah3 = np.ascontiguousarray(
        ah.reshape(out_channels, batch_size, height).transpose(1, 0, 2))
    ah3 = jnp.asarray(ah3)                                   # (B, out_ch, h)
    awt = jnp.asarray(_bicubic_matrix(W, bias_size).T)       # (W, out_w)

    kernel = functools.partial(_lc2d_kernel, height=height, width=W)

    grid_spec = pltpu.PrefetchScalarGridSpec(
        num_scalar_prefetch=0,
        grid=(batch_size,),
        in_specs=[
            pl.BlockSpec(memory_space=pltpu.MemorySpace.SMEM),   # weights (1-D)
            pl.BlockSpec(memory_space=pltpu.MemorySpace.SMEM),   # biases  (1-D)
            pl.BlockSpec((None, height + 2 * PH, W + 2 * PW),
                         lambda b: (b, 0, 0)),                   # padded slice
            pl.BlockSpec((None, out_channels, height),
                         lambda b: (b, 0, 0)),                   # ah columns
            pl.BlockSpec((W, bias_size), lambda b: (0, 0)),      # awT (resident)
        ],
        out_specs=pl.BlockSpec((1, out_channels, bias_size),
                               lambda b: (0, 0, 0)),             # resident out
        scratch_shapes=[pltpu.VMEM((out_channels, W), jnp.float32)],
    )

    return pl.pallas_call(
        kernel,
        out_shape=jax.ShapeDtypeStruct((1, out_channels, bias_size),
                                       jnp.float32),
        grid_spec=grid_spec,
        compiler_params=pltpu.CompilerParams(
            dimension_semantics=("arbitrary",),      # slice axis is a reduction
            vmem_limit_bytes=32 * 1024 * 1024,
        ),
    )(w_flat, b_flat, xpad, ah3, awt)


# ---------------------------------------------------------------------------
# Pure numpy reference (same math) for a sanity check
# ---------------------------------------------------------------------------
def _reference(x, weights, biases, batch_size, out_channels, bias_size):
    x = np.asarray(x, np.float32)
    H_total, W = x.shape
    height = H_total // batch_size
    conv = np.zeros_like(x)
    for b in range(batch_size):
        sl = x[b * height:(b + 1) * height]
        pad = np.pad(sl, ((PH, PH), (PW, PW)))
        acc = np.full((height, W), float(biases[b]), np.float32)
        for dy in range(KH):
            for dx in range(KW):
                acc += pad[dy:dy + height, dx:dx + W] * float(weights[b, dy, dx])
        conv[b * height:(b + 1) * height] = acc
    ah = _bicubic_matrix(H_total, out_channels)
    aw = _bicubic_matrix(W, bias_size)
    return (ah @ conv @ aw.T)[None]


if __name__ == "__main__":
    batch_size = 2
    height, width = 16, 16
    out_channels, bias_size = 16, 32

    key = jax.random.PRNGKey(0)
    kx, kw, kb = jax.random.split(key, 3)
    x = jax.random.normal(kx, (batch_size * height, width), dtype=jnp.float32)
    weights = jax.random.normal(kw, (batch_size, KH, KW), dtype=jnp.float32)
    biases = jax.random.normal(kb, (batch_size,), dtype=jnp.float32)

    out = locally_connected_2d(x, weights, biases, batch_size=batch_size,
                               out_channels=out_channels, bias_size=bias_size)
    out = jax.block_until_ready(out)

    ref = _reference(np.asarray(x), np.asarray(weights), np.asarray(biases),
                     batch_size, out_channels, bias_size)
    assert out.shape == (1, out_channels, bias_size)
    np.testing.assert_allclose(np.asarray(out), ref, rtol=1e-3, atol=1e-3)

    print("KERNEL_OK")
</pallas_src>

<mosaic_0001>
module attributes {stable_mosaic.version = 11 : i64} {
  func.func @_lc2d_kernel(%arg0: i32, %arg1: memref<30xf32, #tpu.memory_space<smem>>, %arg2: memref<2xf32, #tpu.memory_space<smem>>, %arg3: memref<1x18x20xf32, #tpu.memory_space<vmem>>, %arg4: memref<1x16x16xf32, #tpu.memory_space<vmem>>, %arg5: memref<16x32xf32, #tpu.memory_space<vmem>>, %arg6: memref<1x16x32xf32, #tpu.memory_space<vmem>>, %arg7: memref<16x16xf32, #tpu.memory_space<vmem>>) attributes {dimension_semantics = [#tpu.dimension_semantics<arbitrary>], iteration_bounds = array<i64: 2>, scalar_prefetch = 0 : i64, scratch_operands = 1 : i64, tpu.core_type = #tpu.core_type<tc>, window_params = [{transform_indices = @transform_0, window_bounds = array<i64: 30>}, {transform_indices = @transform_1, window_bounds = array<i64: 2>}, {transform_indices = @transform_2, window_bounds = array<i64: 1, 18, 20>}, {transform_indices = @transform_3, window_bounds = array<i64: 1, 16, 16>}, {pipeline_mode = #tpu.pipeline_mode<synchronous>, transform_indices = @transform_4, window_bounds = array<i64: 16, 32>}, {pipeline_mode = #tpu.pipeline_mode<synchronous>, transform_indices = @transform_5, window_bounds = array<i64: 1, 16, 32>}]} {
    %c0_i32 = arith.constant 0 : i32
    %0 = arith.cmpi eq, %arg0, %c0_i32 : i32
    %1 = arith.extui %0 : i1 to i32
    %c0_i32_0 = arith.constant 0 : i32
    %2 = arith.cmpi ne, %1, %c0_i32_0 : i32
    scf.if %2 {
      %cst_40 = arith.constant 0.000000e+00 : f32
      %142 = vector.broadcast %cst_40 : f32 to vector<16x16xf32>
      %c0_41 = arith.constant 0 : index
      %c0_42 = arith.constant 0 : index
      %143 = vector.load %arg7[%c0_41, %c0_42] : memref<16x16xf32, #tpu.memory_space<vmem>>, vector<16x16xf32>
      tpu.vector_store %arg7[%c0_41, %c0_42], %142 {strides = array<i32>} : memref<16x16xf32, #tpu.memory_space<vmem>>, vector<16x16xf32>,
    } else {
    }
    %c15_i32 = arith.constant 15 : i32
    %3 = arith.muli %arg0, %c15_i32 : i32
    %c0 = arith.constant 0 : index
    %c0_1 = arith.constant 0 : index
    %c0_2 = arith.constant 0 : index
    %4 = vector.load %arg3[%c0, %c0_1, %c0_2] : memref<1x18x20xf32, #tpu.memory_space<vmem>>, vector<1x16x20xf32>
    %5 = vector.shape_cast %4 : vector<1x16x20xf32> to vector<16x20xf32>
    %6 = vector.extract_strided_slice %5 {offsets = [0, 0], sizes = [16, 16], strides = [1, 1]} : vector<16x20xf32> to vector<16x16xf32>
    %c0_i32_3 = arith.constant 0 : i32
    %7 = arith.addi %3, %c0_i32_3 : i32
    %c0_i32_4 = arith.constant 0 : i32
    %8 = arith.addi %7, %c0_i32_4 : i32
    %9 = arith.index_cast %8 : i32 to index
    %10 = memref.load %arg1[%9] : memref<30xf32, #tpu.memory_space<smem>>
    %11 = vector.broadcast %10 : f32 to vector<16x16xf32>
    %12 = arith.mulf %6, %11 : vector<16x16xf32>
    %13 = vector.extract_strided_slice %5 {offsets = [0, 1], sizes = [16, 16], strides = [1, 1]} : vector<16x20xf32> to vector<16x16xf32>
    %c0_i32_5 = arith.constant 0 : i32
    %14 = arith.addi %3, %c0_i32_5 : i32
    %c1_i32 = arith.constant 1 : i32
    %15 = arith.addi %14, %c1_i32 : i32
    %16 = arith.index_cast %15 : i32 to index
    %17 = memref.load %arg1[%16] : memref<30xf32, #tpu.memory_space<smem>>
    %18 = vector.broadcast %17 : f32 to vector<16x16xf32>
    %19 = arith.mulf %13, %18 : vector<16x16xf32>
    %20 = arith.addf %12, %19 : vector<16x16xf32>
    %21 = vector.extract_strided_slice %5 {offsets = [0, 2], sizes = [16, 16], strides = [1, 1]} : vector<16x20xf32> to vector<16x16xf32>
    %c0_i32_6 = arith.constant 0 : i32
    %22 = arith.addi %3, %c0_i32_6 : i32
    %c2_i32 = arith.constant 2 : i32
    %23 = arith.addi %22, %c2_i32 : i32
    %24 = arith.index_cast %23 : i32 to index
    %25 = memref.load %arg1[%24] : memref<30xf32, #tpu.memory_space<smem>>
    %26 = vector.broadcast %25 : f32 to vector<16x16xf32>
    %27 = arith.mulf %21, %26 : vector<16x16xf32>
    %28 = arith.addf %20, %27 : vector<16x16xf32>
    %29 = vector.extract_strided_slice %5 {offsets = [0, 3], sizes = [16, 16], strides = [1, 1]} : vector<16x20xf32> to vector<16x16xf32>
    %c0_i32_7 = arith.constant 0 : i32
    %30 = arith.addi %3, %c0_i32_7 : i32
    %c3_i32 = arith.constant 3 : i32
    %31 = arith.addi %30, %c3_i32 : i32
    %32 = arith.index_cast %31 : i32 to index
    %33 = memref.load %arg1[%32] : memref<30xf32, #tpu.memory_space<smem>>
    %34 = vector.broadcast %33 : f32 to vector<16x16xf32>
    %35 = arith.mulf %29, %34 : vector<16x16xf32>
    %36 = arith.addf %28, %35 : vector<16x16xf32>
    %37 = vector.extract_strided_slice %5 {offsets = [0, 4], sizes = [16, 16], strides = [1, 1]} : vector<16x20xf32> to vector<16x16xf32>
    %c0_i32_8 = arith.constant 0 : i32
    %38 = arith.addi %3, %c0_i32_8 : i32
    %c4_i32 = arith.constant 4 : i32
    %39 = arith.addi %38, %c4_i32 : i32
    %40 = arith.index_cast %39 : i32 to index
    %41 = memref.load %arg1[%40] : memref<30xf32, #tpu.memory_space<smem>>
    %42 = vector.broadcast %41 : f32 to vector<16x16xf32>
    %43 = arith.mulf %37, %42 : vector<16x16xf32>
    %44 = arith.addf %36, %43 : vector<16x16xf32>
    %c0_9 = arith.constant 0 : index
    %c1 = arith.constant 1 : index
    %c0_10 = arith.constant 0 : index
    %45 = vector.load %arg3[%c0_9, %c1, %c0_10] : memref<1x18x20xf32, #tpu.memory_space<vmem>>, vector<1x16x20xf32>
    %46 = vector.shape_cast %45 : vector<1x16x20xf32> to vector<16x20xf32>
    %47 = vector.extract_strided_slice %46 {offsets = [0, 0], sizes = [16, 16], strides = [1, 1]} : vector<16x20xf32> to vector<16x16xf32>
    %c5_i32 = arith.constant 5 : i32
    %48 = arith.addi %3, %c5_i32 : i32
    %c0_i32_11 = arith.constant 0 : i32
    %49 = arith.addi %48, %c0_i32_11 : i32
    %50 = arith.index_cast %49 : i32 to index
    %51 = memref.load %arg1[%50] : memref<30xf32, #tpu.memory_space<smem>>
    %52 = vector.broadcast %51 : f32 to vector<16x16xf32>
    %53 = arith.mulf %47, %52 : vector<16x16xf32>
    %54 = arith.addf %44, %53 : vector<16x16xf32>
    %55 = vector.extract_strided_slice %46 {offsets = [0, 1], sizes = [16, 16], strides = [1, 1]} : vector<16x20xf32> to vector<16x16xf32>
    %c5_i32_12 = arith.constant 5 : i32
    %56 = arith.addi %3, %c5_i32_12 : i32
    %c1_i32_13 = arith.constant 1 : i32
    %57 = arith.addi %56, %c1_i32_13 : i32
    %58 = arith.index_cast %57 : i32 to index
    %59 = memref.load %arg1[%58] : memref<30xf32, #tpu.memory_space<smem>>
    %60 = vector.broadcast %59 : f32 to vector<16x16xf32>
    %61 = arith.mulf %55, %60 : vector<16x16xf32>
    %62 = arith.addf %54, %61 : vector<16x16xf32>
    %63 = vector.extract_strided_slice %46 {offsets = [0, 2], sizes = [16, 16], strides = [1, 1]} : vector<16x20xf32> to vector<16x16xf32>
    %c5_i32_14 = arith.constant 5 : i32
    %64 = arith.addi %3, %c5_i32_14 : i32
    %c2_i32_15 = arith.constant 2 : i32
    %65 = arith.addi %64, %c2_i32_15 : i32
    %66 = arith.index_cast %65 : i32 to index
    %67 = memref.load %arg1[%66] : memref<30xf32, #tpu.memory_space<smem>>
    %68 = vector.broadcast %67 : f32 to vector<16x16xf32>
    %69 = arith.mulf %63, %68 : vector<16x16xf32>
    %70 = arith.addf %62, %69 : vector<16x16xf32>
    %71 = vector.extract_strided_slice %46 {offsets = [0, 3], sizes = [16, 16], strides = [1, 1]} : vector<16x20xf32> to vector<16x16xf32>
    %c5_i32_16 = arith.constant 5 : i32
    %72 = arith.addi %3, %c5_i32_16 : i32
    %c3_i32_17 = arith.constant 3 : i32
    %73 = arith.addi %72, %c3_i32_17 : i32
    %74 = arith.index_cast %73 : i32 to index
    %75 = memref.load %arg1[%74] : memref<30xf32, #tpu.memory_space<smem>>
    %76 = vector.broadcast %75 : f32 to vector<16x16xf32>
    %77 = arith.mulf %71, %76 : vector<16x16xf32>
    %78 = arith.addf %70, %77 : vector<16x16xf32>
    %79 = vector.extract_strided_slice %46 {offsets = [0, 4], sizes = [16, 16], strides = [1, 1]} : vector<16x20xf32> to vector<16x16xf32>
    %c5_i32_18 = arith.constant 5 : i32
    %80 = arith.addi %3, %c5_i32_18 : i32
    %c4_i32_19 = arith.constant 4 : i32
    %81 = arith.addi %80, %c4_i32_19 : i32
    %82 = arith.index_cast %81 : i32 to index
    %83 = memref.load %arg1[%82] : memref<30xf32, #tpu.memory_space<smem>>
    %84 = vector.broadcast %83 : f32 to vector<16x16xf32>
    %85 = arith.mulf %79, %84 : vector<16x16xf32>
    %86 = arith.addf %78, %85 : vector<16x16xf32>
    %c0_20 = arith.constant 0 : index
    %c2 = arith.constant 2 : index
    %c0_21 = arith.constant 0 : index
    %87 = vector.load %arg3[%c0_20, %c2, %c0_21] : memref<1x18x20xf32, #tpu.memory_space<vmem>>, vector<1x16x20xf32>
    %88 = vector.shape_cast %87 : vector<1x16x20xf32> to vector<16x20xf32>
    %89 = vector.extract_strided_slice %88 {offsets = [0, 0], sizes = [16, 16], strides = [1, 1]} : vector<16x20xf32> to vector<16x16xf32>
    %c10_i32 = arith.constant 10 : i32
    %90 = arith.addi %3, %c10_i32 : i32
    %c0_i32_22 = arith.constant 0 : i32
    %91 = arith.addi %90, %c0_i32_22 : i32
    %92 = arith.index_cast %91 : i32 to index
    %93 = memref.load %arg1[%92] : memref<30xf32, #tpu.memory_space<smem>>
    %94 = vector.broadcast %93 : f32 to vector<16x16xf32>
    %95 = arith.mulf %89, %94 : vector<16x16xf32>
    %96 = arith.addf %86, %95 : vector<16x16xf32>
    %97 = vector.extract_strided_slice %88 {offsets = [0, 1], sizes = [16, 16], strides = [1, 1]} : vector<16x20xf32> to vector<16x16xf32>
    %c10_i32_23 = arith.constant 10 : i32
    %98 = arith.addi %3, %c10_i32_23 : i32
    %c1_i32_24 = arith.constant 1 : i32
    %99 = arith.addi %98, %c1_i32_24 : i32
    %100 = arith.index_cast %99 : i32 to index
    %101 = memref.load %arg1[%100] : memref<30xf32, #tpu.memory_space<smem>>
    %102 = vector.broadcast %101 : f32 to vector<16x16xf32>
    %103 = arith.mulf %97, %102 : vector<16x16xf32>
    %104 = arith.addf %96, %103 : vector<16x16xf32>
    %105 = vector.extract_strided_slice %88 {offsets = [0, 2], sizes = [16, 16], strides = [1, 1]} : vector<16x20xf32> to vector<16x16xf32>
    %c10_i32_25 = arith.constant 10 : i32
    %106 = arith.addi %3, %c10_i32_25 : i32
    %c2_i32_26 = arith.constant 2 : i32
    %107 = arith.addi %106, %c2_i32_26 : i32
    %108 = arith.index_cast %107 : i32 to index
    %109 = memref.load %arg1[%108] : memref<30xf32, #tpu.memory_space<smem>>
    %110 = vector.broadcast %109 : f32 to vector<16x16xf32>
    %111 = arith.mulf %105, %110 : vector<16x16xf32>
    %112 = arith.addf %104, %111 : vector<16x16xf32>
    %113 = vector.extract_strided_slice %88 {offsets = [0, 3], sizes = [16, 16], strides = [1, 1]} : vector<16x20xf32> to vector<16x16xf32>
    %c10_i32_27 = arith.constant 10 : i32
    %114 = arith.addi %3, %c10_i32_27 : i32
    %c3_i32_28 = arith.constant 3 : i32
    %115 = arith.addi %114, %c3_i32_28 : i32
    %116 = arith.index_cast %115 : i32 to index
    %117 = memref.load %arg1[%116] : memref<30xf32, #tpu.memory_space<smem>>
    %118 = vector.broadcast %117 : f32 to vector<16x16xf32>
    %119 = arith.mulf %113, %118 : vector<16x16xf32>
    %120 = arith.addf %112, %119 : vector<16x16xf32>
    %121 = vector.extract_strided_slice %88 {offsets = [0, 4], sizes = [16, 16], strides = [1, 1]} : vector<16x20xf32> to vector<16x16xf32>
    %c10_i32_29 = arith.constant 10 : i32
    %122 = arith.addi %3, %c10_i32_29 : i32
    %c4_i32_30 = arith.constant 4 : i32
    %123 = arith.addi %122, %c4_i32_30 : i32
    %124 = arith.index_cast %123 : i32 to index
    %125 = memref.load %arg1[%124] : memref<30xf32, #tpu.memory_space<smem>>
    %126 = vector.broadcast %125 : f32 to vector<16x16xf32>
    %127 = arith.mulf %121, %126 : vector<16x16xf32>
    %128 = arith.addf %120, %127 : vector<16x16xf32>
    %129 = arith.index_cast %arg0 : i32 to index
    %130 = memref.load %arg2[%129] : memref<2xf32, #tpu.memory_space<smem>>
    %131 = vector.broadcast %130 : f32 to vector<16x16xf32>
    %132 = arith.addf %128, %131 : vector<16x16xf32>
    %c0_31 = arith.constant 0 : index
    %c0_32 = arith.constant 0 : index
    %133 = vector.load %arg7[%c0_31, %c0_32] : memref<16x16xf32, #tpu.memory_space<vmem>>, vector<16x16xf32>
    %c0_33 = arith.constant 0 : index
    %c0_34 = arith.constant 0 : index
    %c0_35 = arith.constant 0 : index
    %134 = vector.load %arg4[%c0_33, %c0_34, %c0_35] : memref<1x16x16xf32, #tpu.memory_space<vmem>>, vector<1x16x16xf32>
    %135 = vector.shape_cast %134 : vector<1x16x16xf32> to vector<16x16xf32>
    %cst = arith.constant dense<0.000000e+00> : vector<16x16xf32>
    %136 = tpu.matmul %135, %132, %cst {dimension_numbers = #tpu.dot_dimension_numbers<[1], [0], [0], [1], [0, 0, 1, 1], [], []>} : vector<16x16xf32>, vector<16x16xf32>, vector<16x16xf32> -> vector<16x16xf32>
    %137 = arith.addf %133, %136 : vector<16x16xf32>
    %c0_36 = arith.constant 0 : index
    %c0_37 = arith.constant 0 : index
    %138 = vector.load %arg7[%c0_36, %c0_37] : memref<16x16xf32, #tpu.memory_space<vmem>>, vector<16x16xf32>
    tpu.vector_store %arg7[%c0_36, %c0_37], %137 {strides = array<i32>} : memref<16x16xf32, #tpu.memory_space<vmem>>, vector<16x16xf32>,
    %c1_i32_38 = arith.constant 1 : i32
    %139 = arith.cmpi eq, %arg0, %c1_i32_38 : i32
    %140 = arith.extui %139 : i1 to i32
    %c0_i32_39 = arith.constant 0 : i32
    %141 = arith.cmpi ne, %140, %c0_i32_39 : i32
    scf.if %141 {
      %c0_40 = arith.constant 0 : index
      %c0_41 = arith.constant 0 : index
      %142 = vector.load %arg7[%c0_40, %c0_41] : memref<16x16xf32, #tpu.memory_space<vmem>>, vector<16x16xf32>
      %c0_42 = arith.constant 0 : index
      %c0_43 = arith.constant 0 : index
      %143 = vector.load %arg5[%c0_42, %c0_43] : memref<16x32xf32, #tpu.memory_space<vmem>>, vector<16x32xf32>
      %cst_44 = arith.constant dense<0.000000e+00> : vector<16x32xf32>
      %144 = tpu.matmul %142, %143, %cst_44 {dimension_numbers = #tpu.dot_dimension_numbers<[1], [0], [0], [1], [0, 0, 1, 1], [], []>} : vector<16x16xf32>, vector<16x32xf32>, vector<16x32xf32> -> vector<16x32xf32>
      %145 = vector.shape_cast %144 : vector<16x32xf32> to vector<1x16x32xf32>
      %c0_45 = arith.constant 0 : index
      %c0_46 = arith.constant 0 : index
      %c0_47 = arith.constant 0 : index
      %146 = vector.load %arg6[%c0_45, %c0_46, %c0_47] : memref<1x16x32xf32, #tpu.memory_space<vmem>>, vector<1x16x32xf32>
      tpu.vector_store %arg6[%c0_45, %c0_46, %c0_47], %145 {strides = array<i32>} : memref<1x16x32xf32, #tpu.memory_space<vmem>>, vector<1x16x32xf32>,
    } else {
    }
    return
  }
  func.func @transform_0(%arg0: i32) -> i32 {
    %c0_i32 = arith.constant 0 : i32
    %c0_i32_0 = arith.constant 0 : i32
    return %c0_i32 : i32
  }
  func.func @transform_1(%arg0: i32) -> i32 {
    %c0_i32 = arith.constant 0 : i32
    %c0_i32_0 = arith.constant 0 : i32
    return %c0_i32 : i32
  }
  func.func @transform_2(%arg0: i32) -> (i32, i32, i32) {
    %c0_i32 = arith.constant 0 : i32
    %c0_i32_0 = arith.constant 0 : i32
    %c0_i32_1 = arith.constant 0 : i32
    return %arg0, %c0_i32, %c0_i32_0 : i32, i32, i32
  }
  func.func @transform_3(%arg0: i32) -> (i32, i32, i32) {
    %c0_i32 = arith.constant 0 : i32
    %c0_i32_0 = arith.constant 0 : i32
    %c0_i32_1 = arith.constant 0 : i32
    return %arg0, %c0_i32, %c0_i32_0 : i32, i32, i32
  }
  func.func @transform_4(%arg0: i32) -> (i32, i32) {
    %c0_i32 = arith.constant 0 : i32
    %c0_i32_0 = arith.constant 0 : i32
    %c0_i32_1 = arith.constant 0 : i32
    return %c0_i32, %c0_i32_0 : i32, i32
  }
  func.func @transform_5(%arg0: i32) -> (i32, i32, i32) {
    %c0_i32 = arith.constant 0 : i32
    %c0_i32_0 = arith.constant 0 : i32
    %c0_i32_1 = arith.constant 0 : i32
    %c0_i32_2 = arith.constant 0 : i32
    return %c0_i32, %c0_i32_0, %c0_i32_1 : i32, i32, i32
  }
}

</mosaic_0001>

<bundles_post_ra>
// kernel: tpu_custom_call.1
= control target key start
LH: loop header
LB: loop body
LE: loop exit
PB: predicated region body
PF: predicated region fallthrough
CT: control target
= control target key end

     0   :  { %10 = vsyncpa [#allocation5], 0  ;;  %s1124_s0 = inlined_call_operand.vmem [shape: f32[30], index: 0, kind: input, shape index: {}]   ;;  %s1125_s1 = inlined_call_operand.vmem [shape: f32[2], index: 1, kind: input, shape index: {}]   ;;  %s1126_s2 = inlined_call_operand.vmem [shape: f32[2,18,20], index: 2, kind: input, shape index: {}]   ;;  %s1127_s3 = inlined_call_operand.vmem [shape: f32[2,16,16], index: 3, kind: input, shape index: {}]   ;;  %s1128_s4 = inlined_call_operand.vmem [shape: f32[16,32], index: 4, kind: input, shape index: {}]   ;;  %s1129_s5 = inlined_call_operand.hbm [shape: f32[1,16,32], index: 5, kind: output, shape index: {}]  }
   0x1   :  { %11 = vsyncpa [#allocation7], 0 }
   0x2   :  { %12 = vsyncpa [#allocation4], 0  ;;  %s950_s18 = smov 0  }
   0x3 LB: > { %s956_s19 = sadd.s32 4294967295, %s908_s18   ;;  %p739_p0 = scmp.ge.s32.totalorder %s908_s18, 1  ;;  %s908_s18 = sphi %s950_s18, %s18_s18  }
   0x4   : > { %p159_p1 = scmp.lt.s32.totalorder %s908_s18, 3  ;;  %s172_s22 = sshll.u32 %s1124_s0, 4  ;;  %s173_s22 = int_to_ptr.vmem [resolvable:$true] %s172_s22 }
   0x5   : > { %p1130_p4 = scmp.eq.s32.totalorder %s956_s19, 0  ;;  %s183_s26 = sshll.u32 %s1125_s1, 4  ;;  %s184_s26 = int_to_ptr.vmem [resolvable:$true] %s183_s26 }
   0x6   : > { %p964_p3 = pnand %p739_p0, %p159_p1  ;;  %s834_s28 = scalar_lea.vmem %s173_s22, 16 }
   0x7   : > { %p835_p7 = scmp.ne.s32.totalorder %s173_s22, %s834_s28  ;;  %p842_p11 = scmp.lt.s32.totalorder %s173_s22, %s173_s22 }
   0x8   : > { %s1132_s23 = scalar_select %p964_p3, 1, 0 }
   0x9   : > { %p803_p5 = pneg %p964_p3  ;;  %p843_p12 = scmp.lt.s32.totalorder %s834_s28, %s834_s28 }
   0xb   : > { %p976_p6 = pnand %p1130_p4, %p803_p5  ;;  %p844_p13 = por %p843_p12, %p842_p11 }
   0xd   : > { %p836_p8 = pneg %p976_p6 }
   0xf   : > { %p837_p9 = pnand %p836_p8, %p835_p7 }
  0x11   : > { %p838_p10 = pneg %p837_p9 }
  0x13   : > { %p845_p0 = pnand %p844_p13, %p838_p10 }
  0x15   : > { %848 = shalt.err (!%p845_p0)
}
  0x16   : > { %s910_s29 = smov [#allocation3]   ;;  %s849_s30 = scalar_lea.vmem %s184_s26, 16 }
  0x17   : > { %806 = dma.vmem_to_smem (!%p976_p6), %s173_s22, 16, %s910_s29, [#allocation5]  }
  0x18   : > { %p850_p1 = scmp.ne.s32.totalorder %s184_s26, %s849_s30  ;;  %p857_p4 = scmp.lt.s32.totalorder %s184_s26, %s184_s26 }
  0x19   : > { %p858_p3 = scmp.lt.s32.totalorder %s849_s30, %s849_s30 }
  0x1a   : > { %p852_p5 = pnand %p850_p1, %p836_p8 }
  0x1b   : > { %p859_p7 = por %p858_p3, %p857_p4 }
  0x1c   : > { %p853_p2 = pneg %p852_p5 }
  0x1e   : > { %p860_p9 = pnand %p859_p7, %p853_p2 }
  0x20   : > { %863 = shalt.err (!%p860_p9)
}
  0x21   : > { %s911_s6 = smov [#allocation6]   ;;  %p1134_p10 = scmp.ne.s32.totalorder %s1132_s23, 0 }
  0x22   : > { %809 = dma.vmem_to_smem (!%p976_p6), %s184_s26, 16, %s911_s6, [#allocation7]  }
  0x23   : > { %215 = sbr.rel (%p1134_p10) target bundleno = 705 (0x2c1), region = 40  ;;  %p1135_p11 = scmp.eq.s32.totalorder (!%p1134_p10), %s956_s19, 0 }
  0x2a   : > { %895 = dma.done.wait (%p1135_p11), [#allocation5], 16   ;;  %p1136_p12 = pmov %p1135_p11 }
  0x2b   : > { %p1137_p8 = pmov %p1135_p11 }
  0x2c   : > { %897 = vsyncadd (%p1136_p12), [#allocation5], 4294967280 }
  0x2d   : > { %899 = dma.done.wait (%p1137_p8), [#allocation7], 16   ;;  %p1138_p3 = pmov %p1137_p8 }
  0x2f   : > { %901 = vsyncadd (%p1138_p3), [#allocation7], 4294967280 }
  0x30   : > { %225 = sfence }
  0x31   : > { %p248_p2 = scmp.lt.s32.totalorder %s956_s19, 1  ;;  %p1139_p4 = scmp.ne.s32.totalorder %s956_s19, 0 }
  0x32   : > { %vm262_vm0 = vcmask (!%p1139_p4), 130048   ;;  %v912_v0 = vmov (!%p1139_p4), 0.0  }
  0x33   : > { %s249_s7 = scalar_select %p248_p2, %s956_s19, 1 }
  0x34   : > { %261 = sbr.rel (%p1139_p4) target bundleno = 59 (0x3b), region = 52  ;;  %263 = vst.msk [vmem:[#allocation2] sm:$0xff] (!%p1139_p4), %vm262_vm0, %v912_v0  ;;  %264 = vst.msk [vmem:[#allocation2 + $0x8] sm:$0xff] (!%p1139_p4), %vm262_vm0, %v912_v0 }
  0x35   : > { %s790_s8 = smul.u32 24, %s249_s7  ;;  %s759_s9 = sshll.u32 %s249_s7, 4 }
  0x36   : > { %s1001_s12 = scalar_lea.vmem %s1127_s3, %s759_s9 }
  0x37   : > { %s1006_s15 = scalar_lea.vmem %s1126_s2, %s790_s8 }
  0x3b PF: > { %s1011_s16 = smul.u32 15, %s956_s19  ;;  %v266_v1 = vld [vmem:[%s1006_s15] sm:$0xff]  ;;  %v267_v2 = vld [vmem:[%s1006_s15 + $0x8] sm:$0xff]  ;;  %s913_s28 = smov 126   ;;  %vm478_vm1 = vcmask 130048  }
  0x3c   : > { %s914_s29 = smov 127   ;;  %s915_s14 = smov 125   ;;  %v333_v16 = vld [vmem:[%s1006_s15 + $0x9] sm:$0xff]  ;;  %v332_v18 = vld [vmem:[%s1006_s15 + $0x1] sm:$0xff] }
  0x3d   : > { %s287_s17 = sadd.s32 2, %s1011_s16  ;;  %s272_s20 = sadd.s32 1, %s1011_s16  ;;  %v402_v27 = vld [vmem:[%s1006_s15 + $0xa] sm:$0xff]  ;;  %v401_v28 = vld [vmem:[%s1006_s15 + $0x2] sm:$0xff] }
  0x3e   : > { %s288_s21 = sld [smem:[#allocation3 + %s287_s17]]  ;;  %s302_s23 = sadd.s32 3, %s1011_s16  ;;  %v476_v50 = vld [vmem:[%s1001_s12] sm:$0xff] }
  0x3f   : > { %s273_s22 = sld [smem:[#allocation3 + %s272_s20]]  ;;  %s317_s25 = sadd.s32 4, %s1011_s16  ;;  %772 = vmatprep.mubr.msk.f32.mxu0 %vm478_vm1, %v476_v50 }
  0x40   : > { %s303_s24 = sld [smem:[#allocation3 + %s302_s23]]  ;;  %s341_s27 = sadd.s32 6, %s1011_s16 }
  0x41   : > { %s318_s26 = sld [smem:[#allocation3 + %s317_s25]]  ;;  %s356_s6 = sadd.s32 7, %s1011_s16 }
  0x42   : > { %s1022_s30 = sld [smem:[#allocation3 + %s341_s27]]  ;;  %s334_s8 = sadd.s32 5, %s1011_s16 }
  0x43   : > { %s268_s7 = sld [smem:[#allocation3 + %s1011_s16]]  ;;  %s371_s11 = sadd.s32 8, %s1011_s16 }
  0x44   : > { %v289_v3 = vstv %s288_s21  ;;  %s335_s9 = sld [smem:[#allocation3 + %s334_s8]]  ;;  %s403_s13 = sadd.s32 10, %s1011_s16 }
  0x45   : > { %v274_v4 = vstv %s273_s22  ;;  %v290_v5 = vmul.f32 %v289_v3, %v266_v1  ;;  %v291_v7 = vmul.f32 %v289_v3, %v267_v2  ;;  %s1029_s10 = sld [smem:[#allocation3 + %s356_s6]]  ;;  %s386_s21 = sadd.s32 9, %s1011_s16 }
  0x46   : > { %v275_v6 = vmul.f32 %v274_v4, %v266_v1  ;;  %v276_v8 = vmul.f32 %v274_v4, %v267_v2  ;;  %v304_v9 = vstv %s303_s24  ;;  %s404_s17 = sld [smem:[#allocation3 + %s403_s13]]  ;;  %s916_s22 = smov 124  }
  0x47   : > { %294 = vrot.lane.b32.xlu1 %v290_v5, %s913_s28  ;;  %v306_v10 = vmul.f32 %v304_v9, %v267_v2  ;;  %v305_v11 = vmul.f32 %v304_v9, %v266_v1  ;;  %v319_v12 = vstv %s318_s26  ;;  %s372_s20 = sld [smem:[#allocation3 + %s371_s11]]  ;;  %s410_s24 = sadd.s32 11, %s1011_s16 }
  0x48   : > { %279 = vrot.lane.b32.xlu0 %v275_v6, %s914_s29  ;;  %v321_v13 = vmul.f32 %v319_v12, %v267_v2  ;;  %v320_v14 = vmul.f32 %v319_v12, %v266_v1  ;;  %v343_v17 = vstv %s1022_s30  ;;  %s387_s23 = sld [smem:[#allocation3 + %s386_s21]]  ;;  %s425_s26 = sadd.s32 12, %s1011_s16 }
  0x49   : > { %v269_v15 = vstv %s268_s7  ;;  %v345_v24 = vmul.f32 %v343_v17, %v333_v16  ;;  %v344_v25 = vmul.f32 %v343_v17, %v332_v18  ;;  %s411_s25 = sld [smem:[#allocation3 + %s410_s24]]  ;;  %s440_s27 = sadd.s32 13, %s1011_s16 }
  0x4a   : > { %v1038_v19 = vmul.f32 %v269_v15, %v266_v1  ;;  %v1040_v20 = vmul.f32 %v269_v15, %v267_v2  ;;  %v336_v21 = vstv %s335_s9  ;;  %s426_s15 = sld [smem:[#allocation3 + %s425_s26]]  ;;  %s455_s6 = sadd.s32 14, %s1011_s16 }
  0x4b   : > { %296 = vrot.lane.b32.xlu1 %v291_v7, %s913_s28  ;;  %v1043_v22 = vmul.f32 %v336_v21, %v333_v16  ;;  %v1045_v23 = vmul.f32 %v336_v21, %v332_v18  ;;  %v358_v26 = vstv %s1029_s10  ;;  %s441_s30 = sld [smem:[#allocation3 + %s440_s27]]  ;;  %p752_p6 = scmp.ne.s32.totalorder %s956_s19, 1 }
  0x4c   : > { %281 = vrot.lane.b32.xlu0 %v276_v8, %s914_s29  ;;  %v405_v29 = vstv %s404_s17  ;;  %v360_v32 = vmul.f32 %v358_v26, %v333_v16  ;;  %v359_v33 = vmul.f32 %v358_v26, %v332_v18  ;;  %s456_s7 = sld [smem:[#allocation3 + %s455_s6]]  ;;  %vm653_vm2 = vcmask (!%p752_p6), 261120  }
  0x4d   : > { %v1053_v30 = vmul.f32 %v405_v29, %v402_v27  ;;  %v1055_v31 = vmul.f32 %v405_v29, %v401_v28  ;;  %v373_v34 = vstv %s372_s20  ;;  %s470_s16 = sld [smem:[#allocation6 + %s956_s19]] }
  0x4e   : > { %v375_v35 = vmul.f32 %v373_v34, %v333_v16  ;;  %v374_v36 = vmul.f32 %v373_v34, %v332_v18  ;;  %v388_v37 = vstv %s387_s23 }
  0x4f   : > { %311 = vrot.lane.b32.xlu1 %v306_v10, %s915_s14  ;;  %v390_v38 = vmul.f32 %v388_v37, %v333_v16  ;;  %v389_v39 = vmul.f32 %v388_v37, %v332_v18  ;;  %v412_v40 = vstv %s411_s25 }
  0x50   : > { %309 = vrot.lane.b32.xlu0 %v305_v11, %s915_s14  ;;  %v414_v41 = vmul.f32 %v412_v40, %v402_v27  ;;  %v413_v42 = vmul.f32 %v412_v40, %v401_v28  ;;  %v427_v43 = vstv %s426_s15 }
  0x51   : > { %v429_v44 = vmul.f32 %v427_v43, %v402_v27  ;;  %v428_v45 = vmul.f32 %v427_v43, %v401_v28  ;;  %v442_v46 = vstv %s441_s30 }
  0x52   : > { %v444_v47 = vmul.f32 %v442_v46, %v402_v27  ;;  %v443_v48 = vmul.f32 %v442_v46, %v401_v28  ;;  %v457_v49 = vstv %s456_s7  ;;  %v475_v46 = vld [vmem:[#allocation2 + $0x8] sm:$0xff] }
  0x53   : > { %326 = vrot.lane.b32.xlu1 %v321_v13, %s916_s22  ;;  %v459_v51 = vmul.f32 %v457_v49, %v402_v27  ;;  %v458_v52 = vmul.f32 %v457_v49, %v401_v28 }
  0x54   : > { %324 = vrot.lane.b32.xlu0 %v320_v14, %s916_s22 }
  0x57   : > { %350 = vrot.lane.b32.xlu1 %v345_v24, %s914_s29 }
  0x58   : > { %348 = vrot.lane.b32.xlu0 %v344_v25, %s914_s29 }
  0x5b   : > { %365 = vrot.lane.b32.xlu1 %v360_v32, %s913_s28 }
  0x5c   : > { %363 = vrot.lane.b32.xlu0 %v359_v33, %s913_s28 }
  0x5f   : > { %380 = vrot.lane.b32.xlu1 %v375_v35, %s915_s14 }
  0x60   : > { %378 = vrot.lane.b32.xlu0 %v374_v36, %s915_s14 }
  0x63   : > { %395 = vrot.lane.b32.xlu1 %v390_v38, %s916_s22 }
  0x64   : > { %393 = vrot.lane.b32.xlu0 %v389_v39, %s916_s22  ;;  %v471_v39 = vstv %s470_s16 }
  0x67   : > { %419 = vrot.lane.b32.xlu1 %v414_v41, %s914_s29 }
  0x68   : > { %417 = vrot.lane.b32.xlu0 %v413_v42, %s914_s29 }
  0x6b   : > { %434 = vrot.lane.b32.xlu1 %v429_v44, %s913_s28 }
  0x6c   : > { %432 = vrot.lane.b32.xlu0 %v428_v45, %s913_s28  ;;  %v477_v45 = vld [vmem:[%s1001_s12 + $0x8] sm:$0xff] }
  0x6f   : > { %449 = vrot.lane.b32.xlu1 %v444_v47, %s915_s14  ;;  %v474_v47 = vld [vmem:[#allocation2] sm:$0xff] }
  0x70   : > { %447 = vrot.lane.b32.xlu0 %v443_v48, %s915_s14 }
  0x73   : > { %464 = vrot.lane.b32.xlu1 %v459_v51, %s916_s22 }
  0x74   : > { %462 = vrot.lane.b32.xlu0 %v458_v52, %s916_s22  ;;  %v570_v52 = vld [vmem:[%s1128_s4] sm:$0xff] (!%p752_p6) }
  0xb9   : > { %v295_v53 = vpop.permute.xlu1 %294 }
  0xba   : > { %v280_v54 = vpop.permute.xlu0 %279 }
  0xbb   : > { %v285_v57 = vadd.f32 %v280_v54, %v1038_v19 }
  0xbd   : > { %v297_v55 = vpop.permute.xlu1 %296  ;;  %v300_v62 = vadd.f32 %v295_v53, %v285_v57  ;;  %v571_v53 = vld [vmem:[%s1128_s4 + $0x8] sm:$0xff] (!%p752_p6) }
  0xbe   : > { %v282_v56 = vpop.permute.xlu0 %281 }
  0xbf   : > { %v286_v58 = vadd.f32 %v282_v56, %v1040_v20 }
  0xc1   : > { %v301_v59 = vadd.f32 %v297_v55, %v286_v58  ;;  %v312_v60 = vpop.permute.xlu1 %311  ;;  %v786_v55 = vpack.c.bf16 (!%p752_p6), %v571_v53, %v570_v52 }
  0xc2   : > { %v310_v61 = vpop.permute.xlu0 %309 }
  0xc3   : > { %v316_v63 = vadd.f32 %v312_v60, %v301_v59  ;;  %v315_v0 = vadd.f32 %v310_v61, %v300_v62 }
  0xc5   : > { %v327_v1 = vpop.permute.xlu1 %326 }
  0xc6   : > { %v325_v2 = vpop.permute.xlu0 %324  ;;  %v331_v3 = vadd.f32 %v327_v1, %v316_v63 }
  0xc7   : > { %v330_v4 = vadd.f32 %v325_v2, %v315_v0 }
  0xc8   : > { %v340_v5 = vadd.f32 %v1043_v22, %v331_v3 }
  0xc9   : > { %v339_v6 = vadd.f32 %v1045_v23, %v330_v4  ;;  %v351_v7 = vpop.permute.xlu1 %350 }
  0xca   : > { %v349_v8 = vpop.permute.xlu0 %348  ;;  %v355_v11 = vadd.f32 %v351_v7, %v340_v5 }
  0xcb   : > { %v354_v12 = vadd.f32 %v349_v8, %v339_v6 }
  0xcd   : > { %v366_v9 = vpop.permute.xlu1 %365 }
  0xce   : > { %v364_v10 = vpop.permute.xlu0 %363  ;;  %v370_v15 = vadd.f32 %v366_v9, %v355_v11 }
  0xcf   : > { %v369_v16 = vadd.f32 %v364_v10, %v354_v12 }
  0xd1   : > { %v381_v13 = vpop.permute.xlu1 %380 }
  0xd2   : > { %v379_v14 = vpop.permute.xlu0 %378  ;;  %v385_v17 = vadd.f32 %v381_v13, %v370_v15 }
  0xd3   : > { %v384_v18 = vadd.f32 %v379_v14, %v369_v16 }
  0xd5   : > { %v396_v19 = vpop.permute.xlu1 %395 }
  0xd6   : > { %v394_v20 = vpop.permute.xlu0 %393  ;;  %v400_v21 = vadd.f32 %v396_v19, %v385_v17 }
  0xd7   : > { %v399_v24 = vadd.f32 %v394_v20, %v384_v18 }
  0xd8   : > { %v409_v22 = vadd.f32 %v1053_v30, %v400_v21 }
  0xd9   : > { %v408_v23 = vadd.f32 %v1055_v31, %v399_v24  ;;  %v420_v25 = vpop.permute.xlu1 %419 }
  0xda   : > { %v418_v26 = vpop.permute.xlu0 %417  ;;  %v424_v29 = vadd.f32 %v420_v25, %v409_v22 }
  0xdb   : > { %v423_v32 = vadd.f32 %v418_v26, %v408_v23 }
  0xdd   : > { %v435_v27 = vpop.permute.xlu1 %434 }
  0xde   : > { %v433_v28 = vpop.permute.xlu0 %432  ;;  %v439_v35 = vadd.f32 %v435_v27, %v424_v29 }
  0xdf   : > { %v438_v36 = vadd.f32 %v433_v28, %v423_v32 }
  0xe1   : > { %v450_v33 = vpop.permute.xlu1 %449 }
  0xe2   : > { %v448_v34 = vpop.permute.xlu0 %447  ;;  %v454_v37 = vadd.f32 %v450_v33, %v439_v35 }
  0xe3   : > { %v453_v38 = vadd.f32 %v448_v34, %v438_v36 }
  0xe5   : > { %v465_v40 = vpop.permute.xlu1 %464 }
  0xe6   : > { %v463_v41 = vpop.permute.xlu0 %462  ;;  %v469_v30 = vadd.f32 %v465_v40, %v454_v37 }
  0xe7   : > { %v468_v42 = vadd.f32 %v463_v41, %v453_v38 }
  0xe8   : > { %v473_v31 = vadd.f32 %v471_v39, %v469_v30 }
  0xe9   : > { %v472_v43 = vadd.f32 %v471_v39, %v468_v42 }
  0xeb   : > { %v782_v44 = vpack.c.bf16 %v473_v31, %v472_v43 }
  0xed   : > { %783 = vmatprep.subr.bf16.mxu0 %v782_v44 }
  0xee   : > { %785 = vmatpush3.bf16.msra.mxu0 %v782_v44 }
  0xef   : > { %787 = vmatprep.subr.bf16.mxu0 (!%p752_p6), %v786_v55 }
  0xf1   : > { %773 = vmatmul.mubr.msk.f32.vlgmr.msra.gmra.mrb[0].mxu0 %vm478_vm1, %v477_v45 }
  0xf2   : > { %789 = vmatpush3.bf16.msra.mxu0 (!%p752_p6), %v786_v55 }
 0x1c2   : > { %567 = sbr.rel (%p752_p6) target bundleno = 679 (0x2a7), region = 56 }
 0x1c4   : > { %v774_v48 = vpop.f32.mrb[0].mxu0 }
 0x1c5   : > { %v561_v49 = vadd.f32 %v774_v48, %v475_v46  ;;  %v551_v50 = vpop.f32.mrb[1].mxu0 }
 0x1c6   : > { %v560_v51 = vadd.f32 %v551_v50, %v474_v47 }
 0x1c7   : > { %563 = vst.msk [vmem:[#allocation2 + $0x8] sm:$0xff] %vm478_vm1, %v561_v49 }
 0x1c8   : > { %562 = vst.msk [vmem:[#allocation2] sm:$0xff] %vm478_vm1, %v560_v51 }
 0x1ce   : > { %v569_v56 = vld [vmem:[#allocation2 + $0x8] sm:$0xff] }
 0x1cf   : > { %v568_v54 = vld [vmem:[#allocation2] sm:$0xff] }
 0x1d0   : > { %779 = vmatprep.mubr.msk.f32.mxu0 %vm478_vm1, %v568_v54 }
 0x1d1   : > { %780 = vmatmul.mubr.msk.f32.vlgmr.msra.gmra.mrb[0].mxu0 %vm478_vm1, %v569_v56 }
 0x2a4   : > { %v781_v57 = vpop.f32.mrb[0].mxu0 }
 0x2a5   : > { %655 = vst.msk [vmem:[#allocation8 + $0x8] sm:$0xff] %vm653_vm2, %v781_v57  ;;  %v644_v58 = vpop.f32.mrb[1].mxu0 }
 0x2a6   : > { %654 = vst.msk [vmem:[#allocation8] sm:$0xff] %vm653_vm2, %v644_v58 }
 0x2a7 PF: > { %p814_p13 = scmp.eq.s32.totalorder %s956_s19, 1  ;;  %s917_s9 = smov [#allocation8]  }
 0x2a8   : > { %s662_s10 = sshll.u32 %s917_s9, 4  ;;  %s663_s10 = int_to_ptr.vmem [resolvable:$true] %s662_s10 }
 0x2a9   : > { %s864_s11 = scalar_lea.vmem %s663_s10, 256  ;;  %p871_p7 = scmp.lt.s32.totalorder %s663_s10, %s663_s10 }
 0x2aa   : > { %p865_p0 = scmp.ne.s32.totalorder %s663_s10, %s864_s11  ;;  %p872_p9 = scmp.lt.s32.totalorder %s864_s11, %s864_s11 }
 0x2ac   : > { %p866_p1 = pnand %p865_p0, %p814_p13  ;;  %p873_p10 = por %p872_p9, %p871_p7 }
 0x2ae   : > { %p867_p5 = pneg %p866_p1 }
 0x2b0   : > { %p874_p11 = pnand %p873_p10, %p867_p5 }
 0x2b2   : > { %877 = shalt.err (!%p874_p11)
}
 0x2b3   : > { %s878_s17 = scalar_lea.hbm %s1129_s5, 256 }
 0x2b4   : > { %p879_p12 = scmp.ne.s32.totalorder %s1129_s5, %s878_s17  ;;  %p884_p2 = scmp.lt.u32.totalorder %s878_s17, %s1129_s5 }
 0x2b6   : > { %p880_p8 = pnand %p879_p12, %p814_p13 }
 0x2b8   : > { %p881_p3 = pneg %p880_p8 }
 0x2ba   : > { %p886_p4 = pnand %p884_p2, %p881_p3 }
 0x2bc   : > { %889 = shalt.err (!%p886_p4)
}
 0x2bd   : > { %s918_s24 = smov 128   ;;  %s919_s25 = smov 8  }
 0x2be   : > { %800 = dma.vmem_to_hbm [thread:$0]  (%p814_p13), %s663_s10, 256, %s1129_s5, [#allocation4], %s918_s24, %s918_s24, %s919_s25  }
 0x2bf   : > { %903 = dma.done.wait (%p814_p13), [#allocation4], 256  }
 0x2c0   : > { %905 = vsyncadd (%p814_p13), [#allocation4], 4294967040 }
 0x2c1 PF: > { %s18_s18 = sadd.s32 1, %s908_s18  }
 0x2c2   : > { %p15_p6 = scmp.ge.s32.totalorder %s18_s18, 4  }
 0x2c4   :  { %17 = sbr.rel (!%p15_p6) target bundleno = 3 (0x3), region = 87 }
 0x2cb   :  { %678 = vsyncpa [#allocation4], 1 }
 0x2cc   :  { %680 = vsyncpa [#allocation4 + $0x1], 1 }
 0x2cd   :  { %681 = vsyncpa [#allocation5], 1 }
 0x2ce   :  { %683 = vsyncpa [#allocation5 + $0x1], 1 }
 0x2cf   :  { %684 = vsyncpa [#allocation7], 1 }

</bundles_post_ra>
